<compile_context>
chip_gen: v5e
topology: v5e:2x2
jax: 0.10.0
libtpu: 0.0.40
codegen_flags: <defaults>
</compile_context>

<pallas_src>
import jax
import jax.numpy as jnp
from jax.experimental import pallas as pl
from jax.experimental.pallas import tpu as pltpu


def _mu_kernel(x_ref, w_ref, b_ref, mu_ref):
    # (bm, H) @ (H, A) on the MXU with f32 accumulation; bias add (VPU) and
    # tanh (EUP) in f32; single store, cast to the output dtype.
    z = jnp.dot(x_ref[...], w_ref[...], preferred_element_type=jnp.float32)
    mu_ref[...] = jnp.tanh(z + b_ref[...].astype(jnp.float32)).astype(mu_ref.dtype)


def continuous_action_layer(x, w_t, b, log_std, *, block_b=8192):
    """Forward pass of ContinuousActionLayer.

    Args:
      x:       (B, H) input features (f32 or bf16).
      w_t:     (H, A) linear weight, pre-transposed (kernel computes x @ W).
      b:       (1, A) linear bias.
      log_std: (1, A) log-std parameter.
      block_b: batch tile for the grid (rounded up to a multiple of 8).

    Returns:
      dict with 'mu' (B, A) (x.dtype) and 'sigma' (1, A) -- same as PyTorch.
    """
    B, H = x.shape
    A = w_t.shape[1]

    # Enforce the (8,128) sublane rule on the (bm, H) input block.
    block_b = max(8, ((block_b + 7) // 8) * 8)

    # Keep MXU operands in x's dtype (bf16 is native on v5e/v6e/v7x); the dot
    # accumulates in f32 and tanh runs in f32 regardless.
    w_c = w_t.astype(x.dtype)
    b_c = b.astype(jnp.float32)

    if B <= block_b:
        bm = B          # full-extent batch block: always layout-legal, 1 grid step
    else:
        bm = block_b    # multiple of 8; ragged final block is clipped by Pallas
    grid = (pl.cdiv(B, bm),)

    mu = pl.pallas_call(
        _mu_kernel,
        out_shape=jax.ShapeDtypeStruct((B, A), x.dtype),
        grid=grid,
        in_specs=[
            pl.BlockSpec((bm, H), lambda i: (i, 0)),   # batch tile of x
            pl.BlockSpec((H, A), lambda i: (0, 0)),    # weight resident every step
            pl.BlockSpec((1, A), lambda i: (0, 0)),    # bias resident every step
        ],
        out_specs=pl.BlockSpec((bm, A), lambda i: (i, 0)),
        compiler_params=pltpu.CompilerParams(
            dimension_semantics=("parallel",),         # v7x: shard batch across 2 TCs
        ),
    )(x, w_c, b_c)

    # sigma is x-independent and tiny: compute in the wrapper (XLA), keep the
    # PyTorch (1, A) shape (torch.exp(self.log_std)).
    sigma = jnp.exp(log_std.astype(jnp.float32))
    return {"mu": mu, "sigma": sigma}


if __name__ == "__main__":
    # Small shapes consistent with the module: batch=8, input_size=32, action_dim=4.
    B, H, A = 8, 32, 4

    key = jax.random.PRNGKey(0)
    kx, kw, kb, kx2 = jax.random.split(key, 4)

    x = jax.random.normal(kx, (B, H), dtype=jnp.float32)

    # Deterministic "PyTorch-like" Linear init: U(-1/sqrt(H), 1/sqrt(H)).
    bound = 1.0 / jnp.sqrt(jnp.float32(H))
    w = jax.random.uniform(kw, (A, H), minval=-bound, maxval=bound,
                           dtype=jnp.float32)          # (action_dim, input_size)
    b = jax.random.uniform(kb, (1, A), minval=-bound, maxval=bound,
                           dtype=jnp.float32)
    log_std = jnp.zeros((1, A), dtype=jnp.float32)     # nn.Parameter(torch.zeros(1, A))

    # --- small-batch path (single grid step, full-extent batch block) ---
    out = continuous_action_layer(x, w.T, b, log_std)
    jax.block_until_ready(out)

    mu_ref = jnp.tanh(x @ w.T + b)
    sigma_ref = jnp.exp(log_std)
    assert out["mu"].shape == (B, A), "mu shape mismatch"
    assert out["sigma"].shape == (1, A), "sigma shape mismatch"
    assert jnp.allclose(out["mu"], mu_ref, atol=1e-5), "mu mismatch (small batch)"
    assert jnp.allclose(out["sigma"], sigma_ref, atol=1e-6), "sigma mismatch"

    # --- multi-step grid with a ragged final block (no wrapper pad/slice) ---
    B_big = 2000  # not a multiple of the tile -> exercises Pallas block clipping
    x_big = jax.random.normal(kx2, (B_big, H), dtype=jnp.float32)
    out_big = continuous_action_layer(x_big, w.T, b, log_std, block_b=512)
    jax.block_until_ready(out_big)

    mu_big_ref = jnp.tanh(x_big @ w.T + b)
    assert out_big["mu"].shape == (B_big, A), "mu shape mismatch (large batch)"
    assert jnp.allclose(out_big["mu"], mu_big_ref, atol=1e-5), "mu mismatch (large batch)"
    assert jnp.allclose(out_big["sigma"], sigma_ref, atol=1e-6), "sigma mismatch (large batch)"

    print("KERNEL_OK")
</pallas_src>

<mosaic_0001>
module attributes {stable_mosaic.version = 11 : i64} {
  func.func @_mu_kernel(%arg0: i32, %arg1: memref<8x32xf32, #tpu.memory_space<vmem>>, %arg2: memref<32x4xf32, #tpu.memory_space<vmem>>, %arg3: memref<1x4xf32, #tpu.memory_space<vmem>>, %arg4: memref<8x4xf32, #tpu.memory_space<vmem>>) attributes {dimension_semantics = [#tpu.dimension_semantics<parallel>], iteration_bounds = array<i64: 1>, scalar_prefetch = 0 : i64, scratch_operands = 0 : i64, tpu.core_type = #tpu.core_type<tc>, window_params = [{transform_indices = @transform_0, window_bounds = array<i64: 8, 32>}, {pipeline_mode = #tpu.pipeline_mode<synchronous>, transform_indices = @transform_1, window_bounds = array<i64: 32, 4>}, {pipeline_mode = #tpu.pipeline_mode<synchronous>, transform_indices = @transform_2, window_bounds = array<i64: 1, 4>}, {transform_indices = @transform_3, window_bounds = array<i64: 8, 4>}]} {
    %c0 = arith.constant 0 : index
    %c0_0 = arith.constant 0 : index
    %0 = vector.load %arg1[%c0, %c0_0] : memref<8x32xf32, #tpu.memory_space<vmem>>, vector<8x32xf32>
    %c0_1 = arith.constant 0 : index
    %c0_2 = arith.constant 0 : index
    %1 = vector.load %arg2[%c0_1, %c0_2] : memref<32x4xf32, #tpu.memory_space<vmem>>, vector<32x4xf32>
    %cst = arith.constant dense<0.000000e+00> : vector<8x4xf32>
    %2 = tpu.matmul %0, %1, %cst {dimension_numbers = #tpu.dot_dimension_numbers<[1], [0], [0], [1], [0, 0, 1, 1], [], []>} : vector<8x32xf32>, vector<32x4xf32>, vector<8x4xf32> -> vector<8x4xf32>
    %c0_3 = arith.constant 0 : index
    %c0_4 = arith.constant 0 : index
    %3 = vector.load %arg3[%c0_3, %c0_4] : memref<1x4xf32, #tpu.memory_space<vmem>>, vector<1x4xf32>
    %4 = vector.broadcast %3 : vector<1x4xf32> to vector<8x4xf32>
    %5 = arith.addf %2, %4 : vector<8x4xf32>
    %6 = math.tanh %5 : vector<8x4xf32>
    %c0_5 = arith.constant 0 : index
    %c0_6 = arith.constant 0 : index
    %7 = vector.load %arg4[%c0_5, %c0_6] : memref<8x4xf32, #tpu.memory_space<vmem>>, vector<8x4xf32>
    tpu.vector_store %arg4[%c0_5, %c0_6], %6 {strides = array<i32>} : memref<8x4xf32, #tpu.memory_space<vmem>>, vector<8x4xf32>,
    return
  }
  func.func @transform_0(%arg0: i32) -> (i32, i32) {
    %c0_i32 = arith.constant 0 : i32
    %c0_i32_0 = arith.constant 0 : i32
    return %arg0, %c0_i32 : i32, i32
  }
  func.func @transform_1(%arg0: i32) -> (i32, i32) {
    %c0_i32 = arith.constant 0 : i32
    %c0_i32_0 = arith.constant 0 : i32
    %c0_i32_1 = arith.constant 0 : i32
    return %c0_i32, %c0_i32_0 : i32, i32
  }
  func.func @transform_2(%arg0: i32) -> (i32, i32) {
    %c0_i32 = arith.constant 0 : i32
    %c0_i32_0 = arith.constant 0 : i32
    %c0_i32_1 = arith.constant 0 : i32
    return %c0_i32, %c0_i32_0 : i32, i32
  }
  func.func @transform_3(%arg0: i32) -> (i32, i32) {
    %c0_i32 = arith.constant 0 : i32
    %c0_i32_0 = arith.constant 0 : i32
    return %arg0, %c0_i32 : i32, i32
  }
}

</mosaic_0001>

<bundles_post_ra>
// kernel: tpu_custom_call.1
= control target key start
LH: loop header
LB: loop body
LE: loop exit
PB: predicated region body
PF: predicated region fallthrough
CT: control target
= control target key end

     0   :  { %vm23_vm0 = vcmask 261120   ;;  %vm48_vm1 = vcmask 31744   ;;  %s99_s1 = inlined_call_operand.vmem [shape: f32[32,4], index: 1, kind: input, shape index: {}]   ;;  %s100_s2 = inlined_call_operand.vmem [shape: f32[1,4], index: 2, kind: input, shape index: {}]   ;;  %s101_s0 = inlined_call_operand.vmem [shape: f32[8,32], index: 0, kind: input, shape index: {}]   ;;  %s102_s3 = inlined_call_operand.vmem [shape: f32[8,4], index: 3, kind: output, shape index: {}]  }
   0x1   :  { %v18_v0 = vld [vmem:[%s99_s1 + $0x18] sm:$0xff]  ;;  %v17_v1 = vld [vmem:[%s99_s1 + $0x10] sm:$0xff]  ;;  %v16_v2 = vld [vmem:[%s99_s1 + $0x8] sm:$0xff] }
   0x2   :  { %39 = vmatpush.msra.mxu0 %v18_v0  ;;  %v15_v3 = vld [vmem:[%s99_s1] sm:$0xff] }
   0x3   :  { %v14_v4 = vld [vmem:[%s101_s0] sm:$0xff] }
   0x4   :  { %40 = vmatpush.msra.mxu0 %v17_v1  ;;  %v55_v5 = vld [vmem:[%s100_s2] ss:$0 sm:$0xff] }
   0x6   :  { %41 = vmatpush.msra.mxu0 %v16_v2 }
   0x8   :  { %42 = vmatpush.msra.mxu0 %v15_v3 }
   0x9   :  { %54 = vmatmul.msk.f32.vlgmr.msra.gmra.mxu0 %vm23_vm0, %v14_v4 }
  0x86   :  { %v44_v6 = vpop.f32.mrf.mxu0 }
  0x87   :  { %v45_v7 = vadd.f32 %v55_v5, %v44_v6 }
  0x89   :  { %56 = vtanh.f32 %v45_v7 }
  0x8f   :  { %v57_v8 = vpop.eup %56 }
  0x90   :  { %49 = vst.msk [vmem:[%s102_s3] sm:$0xff] %vm48_vm1, %v57_v8 }

</bundles_post_ra>
